<compile_context>
chip_gen: v7x
topology: tpu7x:2x2x1
jax: 0.10.0
libtpu: 0.0.40
codegen_flags: <defaults>
</compile_context>

<pallas_src>
import math

import numpy as np
import jax
import jax.numpy as jnp
from jax.experimental import pallas as pl
from jax.experimental.pallas import tpu as pltpu

_LANE = 128


def _round_up(v, m):
    return ((v + m - 1) // m) * m


def _packed_kernel(x_ref, f_ref, phase_ref, out_ref):
    # x_ref:     (TR, r)    r timesteps packed per 128-lane output row
    # f_ref:     (r, 128)   block-diagonal scale-folded [freqs|freqs] table
    # phase_ref: (1, 128)   [0 ... | pi/2 ...] tiled r times
    # out_ref:   (TR, 128)
    # Skinny matmul on the (otherwise idle) MXU fans each timestep out to its
    # dim lanes; single full-width sin (EUP) and one unmasked 128-lane store.
    emb = jnp.dot(x_ref[...], f_ref[...], preferred_element_type=jnp.float32)
    out_ref[...] = jnp.sin(emb + phase_ref[...])


def _rowwise_kernel(x_ref, f_ref, phase_ref, out_ref):
    # Fallback layout (dim >= 128, dim doesn't divide 128, or unpackable batch).
    # x_ref: (TB, 1)  f_ref: (1, dim)  phase_ref: (1, dim)  out_ref: (TB, dim)
    out_ref[...] = jnp.sin(x_ref[...] * f_ref[...] + phase_ref[...])


def sinusoidal_pos_emb(x, dim, scale=1000.0):
    """JAX/Pallas equivalent of SinusoidalPosEmb.forward(x, scale)."""
    assert dim % 2 == 0, "SinusoidalPosEmb requires dim to be even"
    half_dim = dim // 2
    assert half_dim > 1, "dim must be >= 4 (half_dim - 1 would be zero)"

    x = jnp.asarray(x, dtype=jnp.float32)
    if x.ndim < 1:
        x = x[None]
    assert x.ndim == 1, "expected a 1-D timestep tensor"
    b = x.shape[0]

    # Bake scale into the frequency table at trace time; fold cos into sin via
    # a +pi/2 phase so the kernel does ONE full-row transcendental + store.
    freqs = float(scale) * np.exp(
        np.arange(half_dim, dtype=np.float64) * -(math.log(10000.0) / (half_dim - 1))
    )
    freq_full = np.concatenate([freqs, freqs])                                  # (dim,)
    phase = np.concatenate([np.zeros(half_dim), np.full(half_dim, np.pi / 2.0)])  # (dim,)

    can_pack = (dim < _LANE) and (_LANE % dim == 0) and ((b * dim) % _LANE == 0)

    if can_pack:
        # ---- lane-packed layout: (B, dim) viewed row-major as (rows, 128) ----
        r = _LANE // dim
        n_rows = (b * dim) // _LANE
        x_pk = x.reshape(n_rows, r)                       # free row-major view

        f_np = np.zeros((r, _LANE), dtype=np.float64)     # block-diagonal fan-out
        for i in range(r):
            f_np[i, i * dim:(i + 1) * dim] = freq_full
        f_blk = jnp.asarray(f_np, dtype=jnp.float32)                   # (r, 128)
        ph = jnp.asarray(np.tile(phase, r)[None, :], dtype=jnp.float32)  # (1, 128)

        target_rows = max(8, (4 << 20) // (_LANE * 4))    # ~4 MiB output blocks

        if n_rows <= target_rows:
            # Small/medium batch: single VMEM-resident block, grid-less call.
            out_pk = pl.pallas_call(
                _packed_kernel,
                out_shape=jax.ShapeDtypeStruct((n_rows, _LANE), jnp.float32),
                in_specs=[
                    pl.BlockSpec(memory_space=pltpu.MemorySpace.VMEM),
                    pl.BlockSpec(memory_space=pltpu.MemorySpace.VMEM),
                    pl.BlockSpec(memory_space=pltpu.MemorySpace.VMEM),
                ],
                out_specs=pl.BlockSpec(memory_space=pltpu.MemorySpace.VMEM),
            )(x_pk, f_blk, ph)
        else:
            # Tiled path: ragged trailing block handled by Pallas (no pad/slice
            # copy); keep >=4 blocks so v7x's two TensorCores each get >=2.
            tile = min(target_rows, _round_up(-(-n_rows // 4), 8))
            grid = pl.cdiv(n_rows, tile)
            out_pk = pl.pallas_call(
                _packed_kernel,
                out_shape=jax.ShapeDtypeStruct((n_rows, _LANE), jnp.float32),
                grid=(grid,),
                in_specs=[
                    pl.BlockSpec((tile, r), lambda i: (i, 0)),
                    pl.BlockSpec((r, _LANE), lambda i: (0, 0)),   # constant block
                    pl.BlockSpec((1, _LANE), lambda i: (0, 0)),   # constant block
                ],
                out_specs=pl.BlockSpec((tile, _LANE), lambda i: (i, 0)),
                compiler_params=pltpu.CompilerParams(
                    dimension_semantics=("parallel",)),
            )(x_pk, f_blk, ph)
        return out_pk.reshape(b, dim)                     # free row-major view

    # ---- fallback layout: one timestep per output row ----
    x2d = x[:, None]
    f2d = jnp.asarray(freq_full, dtype=jnp.float32)[None, :]    # (1, dim)
    ph2d = jnp.asarray(phase, dtype=jnp.float32)[None, :]       # (1, dim)

    target_b = max(8, _round_up((4 << 20) // (dim * 4), 8))     # ~4 MiB blocks

    if b <= target_b:
        return pl.pallas_call(
            _rowwise_kernel,
            out_shape=jax.ShapeDtypeStruct((b, dim), jnp.float32),
            in_specs=[
                pl.BlockSpec(memory_space=pltpu.MemorySpace.VMEM),
                pl.BlockSpec(memory_space=pltpu.MemorySpace.VMEM),
                pl.BlockSpec(memory_space=pltpu.MemorySpace.VMEM),
            ],
            out_specs=pl.BlockSpec(memory_space=pltpu.MemorySpace.VMEM),
        )(x2d, f2d, ph2d)

    tile_b = min(target_b, _round_up(-(-b // 4), 8))
    grid = pl.cdiv(b, tile_b)                 # ragged trailing block, no padding
    return pl.pallas_call(
        _rowwise_kernel,
        out_shape=jax.ShapeDtypeStruct((b, dim), jnp.float32),
        grid=(grid,),
        in_specs=[
            pl.BlockSpec((tile_b, 1), lambda i: (i, 0)),
            pl.BlockSpec((1, dim), lambda i: (0, 0)),
            pl.BlockSpec((1, dim), lambda i: (0, 0)),
        ],
        out_specs=pl.BlockSpec((tile_b, dim), lambda i: (i, 0)),
        compiler_params=pltpu.CompilerParams(dimension_semantics=("parallel",)),
    )(x2d, f2d, ph2d)


def _reference(x, dim, scale=1000.0):
    """Pure-JAX port of the PyTorch module (source of truth)."""
    x = jnp.asarray(x, dtype=jnp.float32)
    if x.ndim < 1:
        x = x[None]
    half_dim = dim // 2
    emb = math.log(10000.0) / (half_dim - 1)
    emb = jnp.exp(jnp.arange(half_dim, dtype=jnp.float32) * -emb)
    emb = scale * x[:, None] * emb[None, :]
    return jnp.concatenate([jnp.sin(emb), jnp.cos(emb)], axis=-1)


if __name__ == "__main__":
    dim = 32            # module's self.dim (even)
    # Tolerance: scale folded into the freq table and cos(θ)=sin(θ+π/2) change
    # f32 argument rounding by ~|θ|·2^-24 (≈6e-5 at θ≈1000); any real bug
    # (wrong half, wrong frequency, wrong lane packing) would be O(1) off.
    ATOL = 1e-3

    # 1) Module's actual regime: small batch -> lane-packed, grid-less path.
    x_small = jax.random.uniform(jax.random.PRNGKey(0), (8,), dtype=jnp.float32)
    out = jax.block_until_ready(sinusoidal_pos_emb(x_small, dim, scale=1000.0))
    ref = _reference(x_small, dim, scale=1000.0)
    assert out.shape == (8, dim)
    assert jnp.allclose(out, ref, atol=ATOL, rtol=0.0), "packed small-batch mismatch"

    # 2) Batch not a multiple of 128/dim -> row-wise fallback path.
    x_odd = jax.random.uniform(jax.random.PRNGKey(1), (6,), dtype=jnp.float32)
    out_odd = jax.block_until_ready(sinusoidal_pos_emb(x_odd, dim, scale=1000.0))
    assert out_odd.shape == (6, dim)
    assert jnp.allclose(out_odd, _reference(x_odd, dim, scale=1000.0),
                        atol=ATOL, rtol=0.0), "row-wise fallback mismatch"

    # 3) Tiled lane-packed path with a ragged trailing grid block (no pad/slice).
    x_big = jax.random.uniform(jax.random.PRNGKey(2), (33000,), dtype=jnp.float32)
    out_big = jax.block_until_ready(sinusoidal_pos_emb(x_big, dim, scale=1000.0))
    assert out_big.shape == (33000, dim)
    assert jnp.allclose(out_big, _reference(x_big, dim, scale=1000.0),
                        atol=ATOL, rtol=0.0), "tiled packed mismatch"

    print("KERNEL_OK")
</pallas_src>

<mosaic_0001>
module attributes {stable_mosaic.version = 11 : i64} {
  func.func @_packed_kernel(%arg0: memref<2x4xf32, #tpu.memory_space<vmem>>, %arg1: memref<4x128xf32, #tpu.memory_space<vmem>>, %arg2: memref<1x128xf32, #tpu.memory_space<vmem>>, %arg3: memref<2x128xf32, #tpu.memory_space<vmem>>) attributes {dimension_semantics = [], scalar_prefetch = 0 : i64, scratch_operands = 0 : i64, tpu.core_type = #tpu.core_type<tc>} {
    %c0 = arith.constant 0 : index
    %c0_0 = arith.constant 0 : index
    %0 = vector.load %arg0[%c0, %c0_0] : memref<2x4xf32, #tpu.memory_space<vmem>>, vector<2x4xf32>
    %c0_1 = arith.constant 0 : index
    %c0_2 = arith.constant 0 : index
    %1 = vector.load %arg1[%c0_1, %c0_2] : memref<4x128xf32, #tpu.memory_space<vmem>>, vector<4x128xf32>
    %cst = arith.constant dense<0.000000e+00> : vector<2x128xf32>
    %2 = tpu.matmul %0, %1, %cst {dimension_numbers = #tpu.dot_dimension_numbers<[1], [0], [0], [1], [0, 0, 1, 1], [], []>} : vector<2x4xf32>, vector<4x128xf32>, vector<2x128xf32> -> vector<2x128xf32>
    %c0_3 = arith.constant 0 : index
    %c0_4 = arith.constant 0 : index
    %3 = vector.load %arg2[%c0_3, %c0_4] : memref<1x128xf32, #tpu.memory_space<vmem>>, vector<1x128xf32>
    %4 = vector.broadcast %3 : vector<1x128xf32> to vector<2x128xf32>
    %5 = arith.addf %2, %4 : vector<2x128xf32>
    %6 = math.sin %5 : vector<2x128xf32>
    %c0_5 = arith.constant 0 : index
    %c0_6 = arith.constant 0 : index
    %7 = vector.load %arg3[%c0_5, %c0_6] : memref<2x128xf32, #tpu.memory_space<vmem>>, vector<2x128xf32>
    tpu.vector_store %arg3[%c0_5, %c0_6], %6 {strides = array<i32>} : memref<2x128xf32, #tpu.memory_space<vmem>>, vector<2x128xf32>,
    return
  }
}

</mosaic_0001>

<bundles_post_ra>
// kernel: tpu_custom_call.1
= control target key start
LH: loop header
LB: loop body
LE: loop exit
PB: predicated region body
PF: predicated region fallthrough
CT: control target
= control target key end

     0   :  { %8 = vsyncpa [#allocation3], 0  ;;  %s443_s0 = inlined_call_operand.hbm [shape: f32[2,4], index: 0, kind: input, shape index: {}]   ;;  %s444_s1 = inlined_call_operand.hbm [shape: f32[4,128], index: 1, kind: input, shape index: {}]   ;;  %s445_s2 = inlined_call_operand.vmem [shape: f32[1,128], index: 2, kind: input, shape index: {}]   ;;  %s446_s3 = inlined_call_operand.hbm [shape: f32[2,128], index: 3, kind: output, shape index: {}]  }
   0x1   :  { %9 = vsyncpa [#allocation6], 0 }
   0x2   :  { %10 = vsyncpa [#allocation4], 0  ;;  %s352_s12 = smov [#allocation2]   ;;  %s353_s14 = smov [#allocation5]  }
   0x3   :  { %s17_s13 = sshll.u32 %s352_s12, 4  ;;  %s27_s15 = sshll.u32 %s353_s14, 4  ;;  %s18_s13 = int_to_ptr.vmem [resolvable:$true] %s17_s13  ;;  %s28_s15 = int_to_ptr.vmem [resolvable:$true] %s27_s15 }
   0x4   :  { %s280_s18 = scalar_lea.hbm %s443_s0, 32 }
   0x5   :  { %p281_p0 = scmp.ne.s32.totalorder %s443_s0, %s280_s18  ;;  %p284_p1 = scmp.lt.u32.totalorder %s280_s18, %s443_s0 }
   0x7   :  { %p286_p2 = pnand %p284_p1, %p281_p0 }
   0x9   :  { %289 = shalt.err (!%p286_p2)
}
   0xa   :  { %s290_s23 = scalar_lea.vmem %s18_s13, 32  ;;  %p295_p4 = scmp.lt.s32.totalorder %s18_s13, %s18_s13 }
   0xb   :  { %p291_p3 = scmp.ne.s32.totalorder %s18_s13, %s290_s23  ;;  %p296_p5 = scmp.lt.s32.totalorder %s290_s23, %s290_s23 }
   0xd   :  { %p297_p6 = por %p296_p5, %p295_p4 }
   0xf   :  { %p298_p7 = pnand %p297_p6, %p291_p3 }
  0x11   :  { %301 = shalt.err (!%p298_p7)
}
  0x12   :  { %20 = dma.hbm_to_vmem [thread:$0]  %s443_s0, 32, %s18_s13, [#allocation3]  }
  0x13   :  { %s302_s28 = scalar_lea.hbm %s444_s1, 64 }
  0x14   :  { %p303_p8 = scmp.ne.s32.totalorder %s444_s1, %s302_s28  ;;  %p306_p9 = scmp.lt.u32.totalorder %s302_s28, %s444_s1 }
  0x16   :  { %p308_p10 = pnand %p306_p9, %p303_p8 }
  0x18   :  { %311 = shalt.err (!%p308_p10)
}
  0x19   :  { %s312_s6 = scalar_lea.vmem %s28_s15, 64  ;;  %p317_p12 = scmp.lt.s32.totalorder %s28_s15, %s28_s15 }
  0x1a   :  { %p313_p11 = scmp.ne.s32.totalorder %s28_s15, %s312_s6  ;;  %p318_p13 = scmp.lt.s32.totalorder %s312_s6, %s312_s6 }
  0x1c   :  { %p319_p0 = por %p318_p13, %p317_p12 }
  0x1e   :  { %p320_p1 = pnand %p319_p0, %p313_p11 }
  0x20   :  { %323 = shalt.err (!%p320_p1)
}
  0x21   :  { %30 = dma.hbm_to_vmem [thread:$0]  %s444_s1, 64, %s28_s15, [#allocation6]  }
  0x22   :  { %346 = dma.done.wait [#allocation3], 32  }
  0x23   :  { %347 = vsyncadd [#allocation3], 4294967264 }
  0x24   :  { %348 = dma.done.wait [#allocation6], 64  }
  0x25   :  { %349 = vsyncadd [#allocation6], 4294967232  ;;  %v354_v0 = vmov 0.0   ;;  %vm355_vm0 = vmmov 0   ;;  %vm52_vm1 = vcmask 1043456   ;;  %vm48_vm2 = vcmask 31744  }
  0x26   :  { %256 = vmatprep.subr.mxu0 %v354_v0  ;;  %258 = vmatprep.mubr.msk.f32.mxu0 %vm355_vm0, %v354_v0  ;;  %v40_v1 = vld [vmem:[#allocation5] sm:$0xf]  ;;  %v39_v2 = vld [vmem:[#allocation2] sm:$0x3]  ;;  %v356_v17 = vmov 683565275  }
  0x27   :  { %257 = vmatpush3.msk.msra.mxu0 %vm52_vm1, %v40_v1  ;;  %v247_v3 = vld [vmem:[%s445_s2] ss:$0 sm:$0xff]  ;;  %v357_v19 = vmov 2475754826   ;;  %v358_v22 = vmov 2131351028  }
  0x28   :  { %259 = vmatmul.mubr.msk.f32.vlgmr.msra.gmra.mrb[0].mxu0 %vm48_vm2, %v39_v2  ;;  %v359_v25 = vmov 2102212464   ;;  %v360_v28 = vmov 920167782   ;;  %v361_v31 = vmov 1326507024  }
  0x29   :  { %s362_s1 = smov [#allocation7]  }
  0x2a   :  { %s237_s2 = sshll.u32 %s362_s1, 4  ;;  %s238_s2 = int_to_ptr.vmem [resolvable:$true] %s237_s2 }
  0x2b   :  { %s324_s10 = scalar_lea.vmem %s238_s2, 32  ;;  %p329_p3 = scmp.lt.s32.totalorder %s238_s2, %s238_s2 }
  0x2c   :  { %p325_p2 = scmp.ne.s32.totalorder %s238_s2, %s324_s10  ;;  %p330_p4 = scmp.lt.s32.totalorder %s324_s10, %s324_s10 }
  0x2e   :  { %p331_p5 = por %p330_p4, %p329_p3 }
  0x30   :  { %p332_p6 = pnand %p331_p5, %p325_p2 }
  0xfb   :  { %v122_v4 = vpop.f32.mrb[0].mxu0 }
  0xfc   :  { %v410_v5 = vadd.f32 %v247_v3, %v122_v4  ;;  %v260_v6 = vpop.f32.mrb[1].mxu0 }
  0xfe   :  { %v129_v7 = vand.u32 2139095040, %v410_v5  ;;  %v126_v11 = vand.u32 2147483647, %v410_v5  ;;  %vm128_vm10 = vcmp.lt.s32.totalorder %v410_v5, 0  ;;  %vm218_vm15 = vweird.f32 %v410_v5 }
 0x100   :  { %v130_v8 = vshrl.u32 %v129_v7, 23  ;;  %v133_v14 = vand.u32 8388607, %v126_v11  ;;  %vm127_vm11 = vcmp.le.f32.partialorder %v126_v11, 0.7853982 }
 0x102   :  { %v250_v9 = vadd.s32 4294967169, %v130_v8  ;;  %v134_v33 = vor.u32 8388608, %v133_v14 }
 0x104   :  { %v136_v10 = vadd.s32 1, %v250_v9  ;;  %v174_v47 = vshll.u32 %v134_v33, 8 }
 0x106   :  { %vm137_vm3 = vcmp.gt.s32.totalorder %v136_v10, 0 }
 0x107   :  { %v138_v12 = vsel %vm137_vm3, %v136_v10, 0 }
 0x108   :  { %v140_v13 = vand.u32 31, %v138_v12  ;;  %v139_v16 = vshrl.u32 %v138_v12, 5 }
 0x10a   :  { %v141_v15 = vsub.s32 32, %v140_v13  ;;  %v143_v18 = vshll.u32 %v356_v17, %v140_v13  ;;  %v146_v20 = vshll.u32 %v357_v19, %v140_v13  ;;  %v149_v24 = vshll.u32 %v358_v22, %v140_v13 }
 0x10b   :  { %v152_v27 = vshll.u32 %v359_v25, %v140_v13  ;;  %v155_v30 = vshll.u32 %v360_v28, %v140_v13  ;;  %vm158_vm4 = vcmp.lt.s32.totalorder %v139_v16, 1  ;;  %vm161_vm5 = vcmp.lt.s32.totalorder %v139_v16, 4 }
 0x10c   :  { %v144_v21 = vshrl.u32 %v357_v19, %v141_v15  ;;  %v147_v23 = vshrl.u32 %v358_v22, %v141_v15  ;;  %v150_v26 = vshrl.u32 %v359_v25, %v141_v15  ;;  %v153_v29 = vshrl.u32 %v360_v28, %v141_v15 }
 0x10d   :  { %v156_v32 = vshrl.u32 %v361_v31, %v141_v15  ;;  %v142_v42 = vshrl.u32 %v356_v17, %v141_v15  ;;  %vm160_vm6 = vcmp.lt.s32.totalorder %v139_v16, 3  ;;  %vm159_vm7 = vcmp.lt.s32.totalorder %v139_v16, 2 }
 0x10e   :  { %v145_v34 = vor.u32 %v144_v21, %v143_v18  ;;  %v148_v35 = vor.u32 %v147_v23, %v146_v20  ;;  %v151_v36 = vor.u32 %v150_v26, %v149_v24  ;;  %v154_v37 = vor.u32 %v153_v29, %v152_v27 }
 0x10f   :  { %v157_v38 = vor.u32 %v156_v32, %v155_v30 }
 0x110   :  { %v163_v39 = vsel %vm161_vm5, %v151_v36, 2102212464  ;;  %v166_v40 = vsel %vm158_vm4, %v145_v34, %v148_v35  ;;  %v170_v41 = vsel %vm158_vm4, %v148_v35, %v151_v36  ;;  %v167_v43 = vsel %vm161_vm5, %v154_v37, 920167782 }
 0x111   :  { %v171_v44 = vsel %vm161_vm5, %v157_v38, 1326507024  ;;  %v168_v45 = vsel %vm160_vm6, %v151_v36, %v167_v43  ;;  %v162_v48 = vsel %vm158_vm4, %v142_v42, %v145_v34  ;;  %v164_v49 = vsel %vm160_vm6, %v148_v35, %v163_v39 }
 0x112   :  { %v172_v46 = vsel %vm160_vm6, %v154_v37, %v171_v44  ;;  %v169_v50 = vsel %vm159_vm7, %v166_v40, %v168_v45  ;;  %v165_v56 = vsel %vm159_vm7, %v162_v48, %v164_v49 }
 0x113   :  { %v173_v51 = vsel %vm159_vm7, %v170_v41, %v172_v46  ;;  %v419_v54 = vmul.u32.u64.low %v174_v47, %v169_v50  ;;  %v420_v55 = vmul.u32.u64.high %v174_v47, %v169_v50, %v419_v54  ;;  %v181_v58 = vmul.u32 %v174_v47, %v165_v56 }
 0x114   :  { %v416_v52 = vmul.u32.u64.low %v174_v47, %v173_v51  ;;  %v417_v53 = vmul.u32.u64.high %v174_v47, %v173_v51, %v416_v52 }
 0x115   :  { %v184_v57 = vadd.s32 1, %v420_v55 }
 0x116   :  { %vm183_vm8 = vc.u32 %v417_v53, %v419_v54  ;;  %v182_v7 = vadd.s32 %v419_v54, %v417_v53 }
 0x117   :  { %v185_v59 = vsel %vm183_vm8, %v184_v57, %v420_v55 }
 0x118   :  { %v186_v60 = vadd.s32 %v185_v59, %v181_v58 }
 0x11a   :  { %v187_v61 = vadd.s32 536870912, %v186_v60 }
 0x11c   :  { %v188_v62 = vshrl.u32 %v187_v61, 30 }
 0x11e   :  { %v189_v63 = vshll.u32 %v188_v62, 30  ;;  %v212_v20 = vsub.s32 4, %v188_v62 }
 0x120   :  { %v190_v0 = vsub.s32 %v186_v60, %v189_v63  ;;  %v213_v23 = vsel %vm128_vm10, %v212_v20, %v188_v62 }
 0x121   :  { %v215_v25 = vsel %vm127_vm11, 0, %v213_v23 }
 0x122   :  { %v192_v1 = vsub.s32 0, %v190_v0  ;;  %v219_v26 = vadd.s32 3, %v215_v25 }
 0x124   :  { %v251_v2 = vmin.u32 %v192_v1, %v190_v0  ;;  %v220_v27 = vand.u32 3, %v219_v26 }
 0x126   :  { %v194_v3 = vclz %v251_v2  ;;  %vm225_vm12 = vcmp.eq.s32.totalorder %v220_v27, 2  ;;  %vm222_vm13 = vcmp.eq.s32.totalorder %v220_v27, 0  ;;  %vm221_vm14 = vcmp.lt.s32.totalorder %v220_v27, 2 }
 0x128   :  { %v252_v4 = vadd.s32 4294967294, %v194_v3 }
 0x12a   :  { %vm253_vm9 = vcmp.lt.s32.totalorder %v252_v4, 0 }
 0x12b   :  { %v197_v6 = vsel %vm253_vm9, 0, %v252_v4 }
 0x12c   :  { %v198_v8 = vsub.s32 32, %v197_v6  ;;  %v202_v9 = vsub.s32 4294967266, %v197_v6  ;;  %v199_v10 = vshll.u32 %v190_v0, %v197_v6 }
 0x12e   :  { %v200_v12 = vshrl.u32 %v182_v7, %v198_v8  ;;  %v203_v13 = vadd.s32 127, %v202_v9 }
 0x130   :  { %v201_v14 = vor.u32 %v200_v12, %v199_v10  ;;  %v204_v15 = vshll.u32 %v203_v13, 23 }
 0x132   :  { %v205_v16 = vor.u32 4788187, %v204_v15  ;;  %v208_v18 = vcvt.s32.f32 %v201_v14 }
 0x134   :  { %v206_v17 = vand.u32 2147483647, %v205_v16 }
 0x136   :  { %v209_v19 = vmul.f32 %v208_v18, %v206_v17 }
 0x138   :  { %v210_v21 = vxor.u32 2147483648, %v209_v19 }
 0x13a   :  { %v211_v22 = vsel %vm128_vm10, %v210_v21, %v209_v19 }
 0x13b   :  { %v214_v24 = vsel %vm127_vm11, %v410_v5, %v211_v22 }
 0x13c   :  { %276 = vcosq.f32 %v214_v24 }
 0x13d   :  { %278 = vsinq.f32 %v214_v24 }
 0x146   :  { %v277_v28 = vpop.eup %276 }
 0x147   :  { %v279_v29 = vpop.eup %278  ;;  %v226_v30 = vxor.u32 2147483648, %v277_v28 }
 0x148   :  { %v223_v31 = vxor.u32 2147483648, %v279_v29 }
 0x149   :  { %v227_v32 = vsel %vm225_vm12, %v226_v30, %v279_v29 }
 0x14a   :  { %v224_v33 = vsel %vm222_vm13, %v277_v28, %v223_v31 }
 0x14b   :  { %v228_v11 = vsel %vm221_vm14, %v224_v33, %v227_v32 }
 0x14c   :  { %v229_v34 = vsel %vm218_vm15, nan, %v228_v11 }
 0x14d   :  { %230 = vst [vmem:[#allocation7] sm:$0x3] %v229_v34 }
 0x14e   :  { %335 = shalt.err (!%p332_p6)
}
 0x14f   :  { %s336_s13 = scalar_lea.hbm %s446_s3, 32 }
 0x150   :  { %p337_p7 = scmp.ne.s32.totalorder %s446_s3, %s336_s13  ;;  %p340_p8 = scmp.lt.u32.totalorder %s336_s13, %s446_s3 }
 0x152   :  { %p342_p9 = pnand %p340_p8, %p337_p7 }
 0x154   :  { %345 = shalt.err (!%p342_p9)
}
 0x155   :  { %240 = dma.vmem_to_hbm [thread:$0]  %s238_s2, 32, %s446_s3, [#allocation4]  }
 0x156   :  { %350 = dma.done.wait [#allocation4], 32  }
 0x157   :  { %351 = vsyncadd [#allocation4], 4294967264 }
 0x158   :  { %244 = vsyncpa [#allocation3], 1 }
 0x159   :  { %245 = vsyncpa [#allocation6], 1 }
 0x15a   :  { %246 = vsyncpa [#allocation4], 1 }

</bundles_post_ra>
